<compile_context>
chip_gen: v7x
topology: tpu7x:2x2x1
jax: 0.10.0
libtpu: 0.0.40
codegen_flags: <defaults>
</compile_context>

<pallas_src>
import jax
import jax.numpy as jnp
from jax.experimental import pallas as pl
from jax.experimental.pallas import tpu as pltpu

KH = KW = 3     # nn.MaxPool2d(kernel_size=3): stride defaults to kernel_size
SH = SW = 3


def _maxpool_kernel(x_ref, o_ref):
    # x_ref: (KH*KW, Ho*Wo, TB)  -- the 9 window taps on the leading axis
    # o_ref: (Ho*Wo, TB)         -- lane-dense output block
    acc = x_ref[0]
    for k in range(1, KH * KW):
        acc = jnp.maximum(acc, x_ref[k])
    o_ref[...] = acc


def _pad_value(dtype):
    dtype = jnp.dtype(dtype)
    if jnp.issubdtype(dtype, jnp.floating):
        return -jnp.inf
    if jnp.issubdtype(dtype, jnp.integer):
        return int(jnp.iinfo(dtype).min)
    if dtype == jnp.bool_:
        return False
    raise TypeError(f"unsupported dtype for max-pool: {dtype}")


def maxpool2d_ceil(x, *, vmem_budget_bytes=8 << 20):
    """nn.MaxPool2d(kernel_size=3, ceil_mode=True) on an NCHW tensor."""
    N, C, H, W = x.shape
    # PyTorch ceil_mode output size (padding=0, dilation=1).
    Ho = -(-max(H - KH, 0) // SH) + 1
    Wo = -(-max(W - KW, 0) // SW) + 1
    Hp = (Ho - 1) * SH + KH
    Wp = (Wo - 1) * SW + KW
    B = N * C
    P = Ho * Wo
    pad_val = _pad_value(x.dtype)

    # Single fused layout pass: pad + window-decompose + put B on lanes.
    xb = x.reshape(B, H, W)
    xb = jnp.pad(xb, ((0, 0), (0, Hp - H), (0, Wp - W)),
                 constant_values=pad_val)
    xw = (xb.reshape(B, Ho, KH, Wo, KW)
            .transpose(2, 4, 1, 3, 0)            # (KH, KW, Ho, Wo, B)
            .reshape(KH * KW, P, B))             # (9, Ho*Wo, B)

    # Lane-tile over B, sized against a conservative per-step VMEM budget
    # (double-buffered input block + output block), aligned to 128 lanes.
    itemsize = jnp.dtype(x.dtype).itemsize
    per_lane_bytes = 2 * (KH * KW + 1) * P * itemsize
    tb_budget = max(128, (vmem_budget_bytes // per_lane_bytes) // 128 * 128)
    if B <= tb_budget:
        TB, Bp = B, B
    else:
        TB = tb_budget
        Bp = -(-B // TB) * TB
        xw = jnp.pad(xw, ((0, 0), (0, 0), (0, Bp - B)),
                     constant_values=pad_val)

    out = pl.pallas_call(
        _maxpool_kernel,
        out_shape=jax.ShapeDtypeStruct((P, Bp), x.dtype),
        grid=(Bp // TB,),
        in_specs=[pl.BlockSpec((KH * KW, P, TB), lambda i: (0, 0, i))],
        out_specs=pl.BlockSpec((P, TB), lambda i: (0, i)),
        compiler_params=pltpu.CompilerParams(
            dimension_semantics=("parallel",)),
    )(xw)

    out = out[:, :B]                             # (Ho*Wo, B)
    return out.T.reshape(N, C, Ho, Wo)


def _reference(x):
    N, C, H, W = x.shape
    Ho = -(-max(H - KH, 0) // SH) + 1
    Wo = -(-max(W - KW, 0) // SW) + 1
    Hp = (Ho - 1) * SH + KH
    Wp = (Wo - 1) * SW + KW
    xp = jnp.pad(x.reshape(N * C, H, W),
                 ((0, 0), (0, Hp - H), (0, Wp - W)),
                 constant_values=-jnp.inf)
    return jax.lax.reduce_window(
        xp, -jnp.inf, jax.lax.max, (1, KH, KW), (1, SH, SW), "VALID"
    ).reshape(N, C, Ho, Wo)


if __name__ == "__main__":
    key = jax.random.PRNGKey(0)

    # The module reshapes its input to (-1, 1, 5, 5); use batch = 2.
    x = jax.random.normal(key, (2, 1, 5, 5), dtype=jnp.float32)
    y = jax.block_until_ready(maxpool2d_ceil(x))
    assert y.shape == (2, 1, 2, 2), y.shape
    assert jnp.allclose(y, _reference(x)), "small-case mismatch"

    # Also exercise the tiled (multi-block, lane-padded) pipeline path.
    x2 = jax.random.normal(key, (60, 5, 5, 5), dtype=jnp.float32)
    y2 = jax.block_until_ready(maxpool2d_ceil(x2, vmem_budget_bytes=64_000))
    assert y2.shape == (60, 5, 2, 2), y2.shape
    assert jnp.allclose(y2, _reference(x2)), "tiled-case mismatch"

    print("KERNEL_OK")
</pallas_src>

<mosaic_0001>
module attributes {stable_mosaic.version = 11 : i64} {
  func.func @_maxpool_kernel(%arg0: i32, %arg1: memref<9x4x2xf32, #tpu.memory_space<vmem>>, %arg2: memref<4x2xf32, #tpu.memory_space<vmem>>) attributes {dimension_semantics = [#tpu.dimension_semantics<parallel>], iteration_bounds = array<i64: 1>, scalar_prefetch = 0 : i64, scratch_operands = 0 : i64, tpu.core_type = #tpu.core_type<tc>, window_params = [{transform_indices = @transform_0, window_bounds = array<i64: 9, 4, 2>}, {transform_indices = @transform_1, window_bounds = array<i64: 4, 2>}]} {
    %c0 = arith.constant 0 : index
    %c0_0 = arith.constant 0 : index
    %c0_1 = arith.constant 0 : index
    %0 = vector.load %arg1[%c0, %c0_0, %c0_1] : memref<9x4x2xf32, #tpu.memory_space<vmem>>, vector<1x4x2xf32>
    %1 = vector.shape_cast %0 : vector<1x4x2xf32> to vector<4x2xf32>
    %c1 = arith.constant 1 : index
    %c0_2 = arith.constant 0 : index
    %c0_3 = arith.constant 0 : index
    %2 = vector.load %arg1[%c1, %c0_2, %c0_3] : memref<9x4x2xf32, #tpu.memory_space<vmem>>, vector<1x4x2xf32>
    %3 = vector.shape_cast %2 : vector<1x4x2xf32> to vector<4x2xf32>
    %4 = arith.maximumf %1, %3 : vector<4x2xf32>
    %c2 = arith.constant 2 : index
    %c0_4 = arith.constant 0 : index
    %c0_5 = arith.constant 0 : index
    %5 = vector.load %arg1[%c2, %c0_4, %c0_5] : memref<9x4x2xf32, #tpu.memory_space<vmem>>, vector<1x4x2xf32>
    %6 = vector.shape_cast %5 : vector<1x4x2xf32> to vector<4x2xf32>
    %7 = arith.maximumf %4, %6 : vector<4x2xf32>
    %c3 = arith.constant 3 : index
    %c0_6 = arith.constant 0 : index
    %c0_7 = arith.constant 0 : index
    %8 = vector.load %arg1[%c3, %c0_6, %c0_7] : memref<9x4x2xf32, #tpu.memory_space<vmem>>, vector<1x4x2xf32>
    %9 = vector.shape_cast %8 : vector<1x4x2xf32> to vector<4x2xf32>
    %10 = arith.maximumf %7, %9 : vector<4x2xf32>
    %c4 = arith.constant 4 : index
    %c0_8 = arith.constant 0 : index
    %c0_9 = arith.constant 0 : index
    %11 = vector.load %arg1[%c4, %c0_8, %c0_9] : memref<9x4x2xf32, #tpu.memory_space<vmem>>, vector<1x4x2xf32>
    %12 = vector.shape_cast %11 : vector<1x4x2xf32> to vector<4x2xf32>
    %13 = arith.maximumf %10, %12 : vector<4x2xf32>
    %c5 = arith.constant 5 : index
    %c0_10 = arith.constant 0 : index
    %c0_11 = arith.constant 0 : index
    %14 = vector.load %arg1[%c5, %c0_10, %c0_11] : memref<9x4x2xf32, #tpu.memory_space<vmem>>, vector<1x4x2xf32>
    %15 = vector.shape_cast %14 : vector<1x4x2xf32> to vector<4x2xf32>
    %16 = arith.maximumf %13, %15 : vector<4x2xf32>
    %c6 = arith.constant 6 : index
    %c0_12 = arith.constant 0 : index
    %c0_13 = arith.constant 0 : index
    %17 = vector.load %arg1[%c6, %c0_12, %c0_13] : memref<9x4x2xf32, #tpu.memory_space<vmem>>, vector<1x4x2xf32>
    %18 = vector.shape_cast %17 : vector<1x4x2xf32> to vector<4x2xf32>
    %19 = arith.maximumf %16, %18 : vector<4x2xf32>
    %c7 = arith.constant 7 : index
    %c0_14 = arith.constant 0 : index
    %c0_15 = arith.constant 0 : index
    %20 = vector.load %arg1[%c7, %c0_14, %c0_15] : memref<9x4x2xf32, #tpu.memory_space<vmem>>, vector<1x4x2xf32>
    %21 = vector.shape_cast %20 : vector<1x4x2xf32> to vector<4x2xf32>
    %22 = arith.maximumf %19, %21 : vector<4x2xf32>
    %c8 = arith.constant 8 : index
    %c0_16 = arith.constant 0 : index
    %c0_17 = arith.constant 0 : index
    %23 = vector.load %arg1[%c8, %c0_16, %c0_17] : memref<9x4x2xf32, #tpu.memory_space<vmem>>, vector<1x4x2xf32>
    %24 = vector.shape_cast %23 : vector<1x4x2xf32> to vector<4x2xf32>
    %25 = arith.maximumf %22, %24 : vector<4x2xf32>
    %c0_18 = arith.constant 0 : index
    %c0_19 = arith.constant 0 : index
    %26 = vector.load %arg2[%c0_18, %c0_19] : memref<4x2xf32, #tpu.memory_space<vmem>>, vector<4x2xf32>
    tpu.vector_store %arg2[%c0_18, %c0_19], %25 {strides = array<i32>} : memref<4x2xf32, #tpu.memory_space<vmem>>, vector<4x2xf32>,
    return
  }
  func.func @transform_0(%arg0: i32) -> (i32, i32, i32) {
    %c0_i32 = arith.constant 0 : i32
    %c0_i32_0 = arith.constant 0 : i32
    %c0_i32_1 = arith.constant 0 : i32
    return %c0_i32, %c0_i32_0, %arg0 : i32, i32, i32
  }
  func.func @transform_1(%arg0: i32) -> (i32, i32) {
    %c0_i32 = arith.constant 0 : i32
    %c0_i32_0 = arith.constant 0 : i32
    return %c0_i32, %arg0 : i32, i32
  }
}

</mosaic_0001>

<bundles_post_ra>
// kernel: tpu_custom_call.1
= control target key start
LH: loop header
LB: loop body
LE: loop exit
PB: predicated region body
PF: predicated region fallthrough
CT: control target
= control target key end

     0   :  { %vm33_vm0 = vcmask 11264   ;;  %s87_s0 = inlined_call_operand.vmem [shape: f32[9,4,2], index: 0, kind: input, shape index: {}]   ;;  %s88_s1 = inlined_call_operand.vmem [shape: f32[4,2], index: 1, kind: output, shape index: {}]  }
   0x1   :  { %v8_v0 = vld [vmem:[%s87_s0] sm:$0xf]  ;;  %v39_v1 = vld [vmem:[%s87_s0 + $0x4] sm:$0xf]  ;;  %v40_v2 = vld [vmem:[%s87_s0 + $0x8] sm:$0xf] }
   0x2   :  { %v11_v3 = vmax.f32 %v8_v0, %v39_v1  ;;  %v41_v4 = vld [vmem:[%s87_s0 + $0xc] sm:$0xf]  ;;  %v42_v6 = vld [vmem:[%s87_s0 + $0x10] sm:$0xf]  ;;  %v43_v8 = vld [vmem:[%s87_s0 + $0x14] sm:$0xf] }
   0x3   :  { %v44_v10 = vld [vmem:[%s87_s0 + $0x18] sm:$0xf]  ;;  %v45_v12 = vld [vmem:[%s87_s0 + $0x1c] sm:$0xf]  ;;  %v46_v14 = vld [vmem:[%s87_s0 + $0x20] sm:$0xf] }
   0x4   :  { %v14_v5 = vmax.f32 %v11_v3, %v40_v2 }
   0x6   :  { %v17_v7 = vmax.f32 %v14_v5, %v41_v4 }
   0x8   :  { %v20_v9 = vmax.f32 %v17_v7, %v42_v6 }
   0xa   :  { %v23_v11 = vmax.f32 %v20_v9, %v43_v8 }
   0xc   :  { %v26_v13 = vmax.f32 %v23_v11, %v44_v10 }
   0xe   :  { %v29_v15 = vmax.f32 %v26_v13, %v45_v12 }
  0x10   :  { %v32_v16 = vmax.f32 %v29_v15, %v46_v14 }
  0x12   :  { %34 = vst.msk [vmem:[%s88_s1] sm:$0xf] %vm33_vm0, %v32_v16 }

</bundles_post_ra>
